<compile_context>
chip_gen: v7x
topology: tpu7x:2x2x1
jax: 0.10.0
libtpu: 0.0.40
codegen_flags: <defaults>
</compile_context>

<pallas_src>
import functools

import jax
import jax.numpy as jnp
from jax.experimental import pallas as pl
from jax.experimental.pallas import tpu as pltpu


def _round_up(a: int, b: int) -> int:
    return (a + b - 1) // b * b


def _sigmoid_linear_kernel(x_ref, w_ref, b_ref, o_ref, acc_ref):
    # x_ref: (tm, tk)   activation tile
    # w_ref: (tn, tk)   weight tile in PyTorch layout (out, in) -- no transpose
    # b_ref: (1,  tn)   bias tile
    # o_ref: (tm, tn)   output tile
    # acc_ref: (tm, tn) f32 accumulator, persistent across the K grid axis
    k = pl.program_id(2)

    @pl.when(k == 0)
    def _init():
        acc_ref[...] = jnp.zeros_like(acc_ref)

    # Contract x's K (dim 1) with w's K (dim 1): MXU consumes the transposed-RHS
    # contraction natively, so no transpose is ever materialized.
    acc_ref[...] += jax.lax.dot_general(
        x_ref[...],
        w_ref[...],
        dimension_numbers=(((1,), (1,)), ((), ())),
        preferred_element_type=jnp.float32,
    )

    @pl.when(k == pl.num_programs(2) - 1)
    def _finalize():
        z = acc_ref[...] + b_ref[...]  # (tm, tn) + (1, tn) broadcast
        # sigmoid(z) = 1 / (1 + exp(-z)); exp -> EUP, reciprocal -> EUP (vrcp).
        sig = pl.reciprocal(1.0 + jnp.exp(-z), approx=True)
        o_ref[...] = sig.astype(o_ref.dtype)


@functools.partial(jax.jit, static_argnames=("tm", "tn", "tk", "mxu_feed_dtype"))
def sigmoid_linear(x, weight, bias, *, tm=None, tn=128, tk=None,
                   mxu_feed_dtype=None):
    """y = sigmoid(x @ weight.T + bias), matching nn.Linear + nn.Sigmoid.

    x:      (B, input_dim)           float32
    weight: (output_dim, input_dim)  float32 (PyTorch layout, NOT transposed)
    bias:   (output_dim,)            float32
    """
    B, in_dim = x.shape
    out_dim, in_dim_w = weight.shape
    assert in_dim_w == in_dim and bias.shape == (out_dim,)
    out_dtype = x.dtype

    # Tile sizes: sublane-aligned M, lane-dense (multiple-of-128) N and K.
    if tm is None:
        tm = min(128, _round_up(B, 8))
    if tk is None:
        tk = min(512, _round_up(in_dim, 128))
    tn = min(tn, _round_up(out_dim, 128))

    # Pad operands so every dim is a whole number of tiles (zero padding is
    # exact for the matmul; padded output rows/cols are sliced off below).
    Mp = _round_up(B, tm)
    Kp = _round_up(in_dim, tk)
    Np = _round_up(out_dim, tn)

    xp = x if (Mp == B and Kp == in_dim) else jnp.pad(
        x, ((0, Mp - B), (0, Kp - in_dim)))
    wp = weight if (Np == out_dim and Kp == in_dim) else jnp.pad(
        weight, ((0, Np - out_dim), (0, Kp - in_dim)))
    bp = bias if Np == out_dim else jnp.pad(bias, (0, Np - out_dim))
    bp = bp.reshape(1, Np)

    if mxu_feed_dtype is not None:
        # bf16 MXU feed on v6e/v7x; f32 accumulator preserves accuracy.
        xp = xp.astype(mxu_feed_dtype)
        wp = wp.astype(mxu_feed_dtype)

    grid = (Mp // tm, Np // tn, Kp // tk)

    out_padded = pl.pallas_call(
        _sigmoid_linear_kernel,
        out_shape=jax.ShapeDtypeStruct((Mp, Np), out_dtype),
        grid_spec=pltpu.PrefetchScalarGridSpec(
            num_scalar_prefetch=0,
            grid=grid,
            in_specs=[
                pl.BlockSpec((tm, tk), lambda i, j, k: (i, k)),   # x
                pl.BlockSpec((tn, tk), lambda i, j, k: (j, k)),   # weight (out,in)
                pl.BlockSpec((1, tn), lambda i, j, k: (0, j)),    # bias
            ],
            out_specs=pl.BlockSpec((tm, tn), lambda i, j, k: (i, j)),
            scratch_shapes=[pltpu.VMEM((tm, tn), jnp.float32)],
        ),
        compiler_params=pltpu.CompilerParams(
            dimension_semantics=("parallel", "parallel", "arbitrary"),
            vmem_limit_bytes=32 * 1024 * 1024,  # sized for v7x's smaller VMEM
        ),
    )(xp, wp, bp)

    return out_padded[:B, :out_dim]


if __name__ == "__main__":
    key = jax.random.PRNGKey(0)
    kx, kb, kw = jax.random.split(key, 3)

    # Small demo shapes; tm=8 / tk=128 force a (2, 1, 2) grid so the M
    # "parallel" axis and the K accumulator path are both exercised.
    B, input_dim, output_dim = 16, 160, 48

    x = jax.random.normal(kx, (B, input_dim), dtype=jnp.float32)

    # Parameters matching the PyTorch module's __init__:
    #   weight.normal_(0, 0.01) then weight.fill_(0)  -> weight == 0
    #   bias: nn.Linear default U(-1/sqrt(in_dim), 1/sqrt(in_dim))
    weight = jnp.zeros((output_dim, input_dim), dtype=jnp.float32)
    bound = 1.0 / (input_dim ** 0.5)
    bias = jax.random.uniform(kb, (output_dim,), jnp.float32, -bound, bound)

    out = jax.block_until_ready(sigmoid_linear(x, weight, bias, tm=8, tk=128))
    ref = jax.nn.sigmoid(x @ weight.T + bias)
    assert out.shape == (B, output_dim)
    # approx=True reciprocal (EUP vrcp) has ~1e-4 relative error -> 2e-3 tol.
    assert jnp.allclose(out, ref, atol=2e-3, rtol=2e-3), "mismatch (module-init params)"

    # Extra check with non-zero weights to exercise the K-tiled MXU accumulation.
    weight2 = 0.05 * jax.random.normal(kw, (output_dim, input_dim), dtype=jnp.float32)
    out2 = jax.block_until_ready(sigmoid_linear(x, weight2, bias, tm=8, tk=128))
    ref2 = jax.nn.sigmoid(x @ weight2.T + bias)
    assert jnp.allclose(out2, ref2, atol=2e-3, rtol=2e-3), "mismatch (random weights)"

    print("KERNEL_OK")
</pallas_src>

<mosaic_0001>
module attributes {stable_mosaic.version = 11 : i64} {
  func.func @_sigmoid_linear_kernel(%arg0: i32, %arg1: i32, %arg2: i32, %arg3: memref<8x128xf32, #tpu.memory_space<vmem>>, %arg4: memref<128x128xf32, #tpu.memory_space<vmem>>, %arg5: memref<1x128xf32, #tpu.memory_space<vmem>>, %arg6: memref<8x128xf32, #tpu.memory_space<vmem>>, %arg7: memref<8x128xf32, #tpu.memory_space<vmem>>) attributes {dimension_semantics = [#tpu.dimension_semantics<parallel>, #tpu.dimension_semantics<parallel>, #tpu.dimension_semantics<arbitrary>], iteration_bounds = array<i64: 2, 1, 2>, scalar_prefetch = 0 : i64, scratch_operands = 1 : i64, tpu.core_type = #tpu.core_type<tc>, window_params = [{transform_indices = @transform_0, window_bounds = array<i64: 8, 128>}, {transform_indices = @transform_1, window_bounds = array<i64: 128, 128>}, {transform_indices = @transform_2, window_bounds = array<i64: 1, 128>}, {transform_indices = @transform_3, window_bounds = array<i64: 8, 128>}]} {
    %c0_i32 = arith.constant 0 : i32
    %0 = arith.cmpi eq, %arg2, %c0_i32 : i32
    %1 = arith.extui %0 : i1 to i32
    %c0_i32_0 = arith.constant 0 : i32
    %2 = arith.cmpi ne, %1, %c0_i32_0 : i32
    scf.if %2 {
      %cst_9 = arith.constant 0.000000e+00 : f32
      %12 = vector.broadcast %cst_9 : f32 to vector<8x128xf32>
      %c0_10 = arith.constant 0 : index
      %c0_11 = arith.constant 0 : index
      %13 = vector.load %arg7[%c0_10, %c0_11] : memref<8x128xf32, #tpu.memory_space<vmem>>, vector<8x128xf32>
      tpu.vector_store %arg7[%c0_10, %c0_11], %12 {strides = array<i32>} : memref<8x128xf32, #tpu.memory_space<vmem>>, vector<8x128xf32>,
    } else {
    }
    %c0 = arith.constant 0 : index
    %c0_1 = arith.constant 0 : index
    %3 = vector.load %arg7[%c0, %c0_1] : memref<8x128xf32, #tpu.memory_space<vmem>>, vector<8x128xf32>
    %c0_2 = arith.constant 0 : index
    %c0_3 = arith.constant 0 : index
    %4 = vector.load %arg3[%c0_2, %c0_3] : memref<8x128xf32, #tpu.memory_space<vmem>>, vector<8x128xf32>
    %c0_4 = arith.constant 0 : index
    %c0_5 = arith.constant 0 : index
    %5 = vector.load %arg4[%c0_4, %c0_5] : memref<128x128xf32, #tpu.memory_space<vmem>>, vector<128x128xf32>
    %cst = arith.constant dense<0.000000e+00> : vector<8x128xf32>
    %6 = tpu.matmul %4, %5, %cst {dimension_numbers = #tpu.dot_dimension_numbers<[1], [1], [0], [0], [0, 0, 1, 0], [], []>} : vector<8x128xf32>, vector<128x128xf32>, vector<8x128xf32> -> vector<8x128xf32>
    %7 = arith.addf %3, %6 : vector<8x128xf32>
    %c0_6 = arith.constant 0 : index
    %c0_7 = arith.constant 0 : index
    %8 = vector.load %arg7[%c0_6, %c0_7] : memref<8x128xf32, #tpu.memory_space<vmem>>, vector<8x128xf32>
    tpu.vector_store %arg7[%c0_6, %c0_7], %7 {strides = array<i32>} : memref<8x128xf32, #tpu.memory_space<vmem>>, vector<8x128xf32>,
    %c1_i32 = arith.constant 1 : i32
    %9 = arith.cmpi eq, %arg2, %c1_i32 : i32
    %10 = arith.extui %9 : i1 to i32
    %c0_i32_8 = arith.constant 0 : i32
    %11 = arith.cmpi ne, %10, %c0_i32_8 : i32
    scf.if %11 {
      %c0_9 = arith.constant 0 : index
      %c0_10 = arith.constant 0 : index
      %12 = vector.load %arg7[%c0_9, %c0_10] : memref<8x128xf32, #tpu.memory_space<vmem>>, vector<8x128xf32>
      %c0_11 = arith.constant 0 : index
      %c0_12 = arith.constant 0 : index
      %13 = vector.load %arg5[%c0_11, %c0_12] : memref<1x128xf32, #tpu.memory_space<vmem>>, vector<1x128xf32>
      %14 = vector.broadcast %13 : vector<1x128xf32> to vector<8x128xf32>
      %15 = arith.addf %12, %14 : vector<8x128xf32>
      %cst_13 = arith.constant 0.000000e+00 : f32
      %16 = vector.broadcast %cst_13 : f32 to vector<8x128xf32>
      %17 = arith.subf %16, %15 : vector<8x128xf32>
      %18 = math.exp %17 : vector<8x128xf32>
      %cst_14 = arith.constant 1.000000e+00 : f32
      %19 = vector.broadcast %cst_14 : f32 to vector<8x128xf32>
      %20 = arith.addf %19, %18 : vector<8x128xf32>
      %21 = tpu.reciprocal %20 {approx = true} : vector<8x128xf32> -> vector<8x128xf32>
      %c0_15 = arith.constant 0 : index
      %c0_16 = arith.constant 0 : index
      %22 = vector.load %arg6[%c0_15, %c0_16] : memref<8x128xf32, #tpu.memory_space<vmem>>, vector<8x128xf32>
      tpu.vector_store %arg6[%c0_15, %c0_16], %21 {strides = array<i32>} : memref<8x128xf32, #tpu.memory_space<vmem>>, vector<8x128xf32>,
    } else {
    }
    return
  }
  func.func @transform_0(%arg0: i32, %arg1: i32, %arg2: i32) -> (i32, i32) {
    %c0_i32 = arith.constant 0 : i32
    return %arg0, %arg2 : i32, i32
  }
  func.func @transform_1(%arg0: i32, %arg1: i32, %arg2: i32) -> (i32, i32) {
    %c0_i32 = arith.constant 0 : i32
    return %arg1, %arg2 : i32, i32
  }
  func.func @transform_2(%arg0: i32, %arg1: i32, %arg2: i32) -> (i32, i32) {
    %c0_i32 = arith.constant 0 : i32
    %c0_i32_0 = arith.constant 0 : i32
    return %c0_i32, %arg1 : i32, i32
  }
  func.func @transform_3(%arg0: i32, %arg1: i32, %arg2: i32) -> (i32, i32) {
    %c0_i32 = arith.constant 0 : i32
    return %arg0, %arg1 : i32, i32
  }
}

</mosaic_0001>

<bundles_post_ra>
// kernel: sigmoid_linear.1
= control target key start
LH: loop header
LB: loop body
LE: loop exit
PB: predicated region body
PF: predicated region fallthrough
CT: control target
= control target key end

     0   :  { %s1124_s0 = inlined_call_operand.vmem [shape: f32[16,256], index: 0, kind: input, shape index: {}]   ;;  %s1125_s1 = inlined_call_operand.vmem [shape: f32[128,256], index: 1, kind: input, shape index: {}]   ;;  %s1126_s2 = inlined_call_operand.vmem [shape: f32[1,128], index: 2, kind: input, shape index: {}]   ;;  %s1127_s3 = inlined_call_operand.hbm [shape: f32[16,128], index: 3, kind: output, shape index: {}]  }
   0x1   :  { %1129 = sst [smem:[#allocation8_spill]] %s1125_s1 }
   0x2   :  { %8 = vsyncpa [#allocation5], 0 }
   0x3   :  { %10 = vsyncpa [#allocation5 + $0x1], 0  ;;  %s903_s12 = smov 0   ;;  %s905_s13 = smov 0  }
   0x4   :  { %s907_s14 = smov 0   ;;  %s909_s15 = smov 0  }
   0x5   :  { %s911_s16 = smov 0   ;;  %s913_s17 = smov 0  }
   0x6   :  { %s915_s18 = smov 0   ;;  %s917_s19 = smov 0  }
   0x7   :  { %s919_s20 = smov 0   ;;  %s921_s21 = smov 0  }
   0x8 LB: > { %s576_s22 = sadd.s32 4294967295, %s876_s21   ;;  %s577_s23 = sadd.s32 4294967294, %s876_s21   ;;  %s876_s21 = sphi %s921_s21, %s16_s21   ;;  %s872_s20 = sphi %s919_s20, %s1144_s20   ;;  %s868_s19 = sphi %s917_s19, %s1143_s19   ;;  %s864_s18 = sphi %s915_s18, %s1142_s18   ;;  %s860_s17 = sphi %s913_s17, %s1141_s17   ;;  %s856_s16 = sphi %s911_s16, %s1140_s16   ;;  %s852_s15 = sphi %s909_s15, %s1139_s15   ;;  %s848_s14 = sphi %s907_s14, %s1138_s14   ;;  %s844_s13 = sphi %s905_s13, %s1137_s13   ;;  %s840_s12 = sphi %s903_s12, %s1136_s12  }
   0x9   : > { %s28_s24 = sadd.s32 1, %s868_s19  ;;  %s35_s25 = sadd.s32 1, %s872_s20 }
   0xa   : > { %p29_p0 = scmp.ge.s32.totalorder %s28_s24, 2  ;;  %s72_s26 = sadd.s32 1, %s856_s16 }
   0xb   : > { %p79_p1 = scmp.ne.s32.totalorder %s856_s16, %s852_s15  ;;  %p80_p2 = scmp.eq.s32.totalorder %s876_s21, 0 }
   0xc   : > { %s1146_s24 = smov (%p29_p0, %s28_s24), 0  ;;  %s1148_s25 = smov (!%p29_p0, %s35_s25), %s872_s20 }
   0xd   : > { %s68_s27 = ssub.s32 %s868_s19, %s1146_s24  ;;  %p966_p3 = por %p80_p2, %p79_p1 }
   0xe   : > { %p37_p4 = scmp.ge.s32.totalorder %s1148_s25, 2  ;;  %p70_p5 = scmp.eq.s32.totalorder %s68_s27, 0 }
   0xf   : > { %s126_s29 = sadd.s32 1, %s848_s14  ;;  %p136_p6 = scmp.ne.s32.totalorder %s848_s14, %s844_s13 }
  0x10   : > { %s1150_s25 = smov (%p37_p4, %s1148_s25), 0  ;;  %p137_p7 = scmp.eq.s32.totalorder %s576_s22, 3 }
  0x11   : > { %1131 = sst [smem:[#allocation7_spill]] %s1150_s25  ;;  %s121_s4 = ssub.s32 %s872_s20, %s1150_s25 }
  0x12   : > { %s976_s30 = scalar_select %p70_p5, %s856_s16, %s72_s26  }
  0x13   : > { %p124_p8 = scmp.eq.s32.totalorder %s121_s4, 0  ;;  %p142_p9 = scmp.ne.s32.totalorder %s844_s13, %s840_s12 }
  0x14   : > { %p982_p10 = por %p137_p7, %p136_p6  ;;  %p143_p11 = scmp.eq.s32.totalorder %s577_s23, 3 }
  0x15   : > { %s987_s6 = scalar_select %p124_p8, %s848_s14, %s126_s29  }
  0x16   : > { %p989_p12 = por %p143_p11, %p142_p9  ;;  %p580_p13 = scmp.ge.s32.totalorder %s876_s21, 4 }
  0x18   : > { %165 = sbr.rel (%p580_p13) target bundleno = 49 (0x31), region = 20 }
  0x1f   : > { %179 = sbr.rel (!%p966_p3) target bundleno = 49 (0x31), region = 28  ;;  %s181_s8 = sand.u32 (%p966_p3), 1, %s856_s16  }
  0x20   : > { %s582_s9 = sshll.u32 (%p966_p3), %s868_s19, 3  ;;  %s581_s10 = sshll.u32 (%p966_p3), %s181_s8, 7 }
  0x21   : > { %s1134_s1 = sld [smem:[#allocation8_spill]] (%p966_p3)  ;;  %s183_s26 = scalar_lea.vmem (%p966_p3), [#allocation3], %s581_s10 }
  0x27   : > { %s1001_s23 = scalar_lea.vmem %s1134_s1, %s582_s9 }
  0x28   : > { %v246_v0 = vld [vmem:[%s1001_s23] sm:$0xff]  ;;  %v248_v1 = vld [vmem:[%s1001_s23 + $0x10] sm:$0xff] }
  0x29   : > { %v250_v2 = vld [vmem:[%s1001_s23 + $0x20] sm:$0xff]  ;;  %247 = vst [vmem:[%s183_s26] sm:$0xff] %v246_v0  ;;  %249 = vst [vmem:[%s183_s26 + $0x8] sm:$0xff] %v248_v1  ;;  %v252_v3 = vld [vmem:[%s1001_s23 + $0x30] sm:$0xff] }
  0x2a   : > { %251 = vst [vmem:[%s183_s26 + $0x10] sm:$0xff] %v250_v2  ;;  %v254_v4 = vld [vmem:[%s1001_s23 + $0x40] sm:$0xff]  ;;  %v256_v5 = vld [vmem:[%s1001_s23 + $0x50] sm:$0xff]  ;;  %253 = vst [vmem:[%s183_s26 + $0x18] sm:$0xff] %v252_v3 }
  0x2b   : > { %255 = vst [vmem:[%s183_s26 + $0x20] sm:$0xff] %v254_v4  ;;  %257 = vst [vmem:[%s183_s26 + $0x28] sm:$0xff] %v256_v5  ;;  %v258_v6 = vld [vmem:[%s1001_s23 + $0x60] sm:$0xff]  ;;  %v260_v7 = vld [vmem:[%s1001_s23 + $0x70] sm:$0xff] }
  0x2c   : > { %v262_v8 = vld [vmem:[%s1001_s23 + $0x80] sm:$0xff]  ;;  %259 = vst [vmem:[%s183_s26 + $0x30] sm:$0xff] %v258_v6  ;;  %261 = vst [vmem:[%s183_s26 + $0x38] sm:$0xff] %v260_v7  ;;  %v264_v9 = vld [vmem:[%s1001_s23 + $0x90] sm:$0xff] }
  0x2d   : > { %263 = vst [vmem:[%s183_s26 + $0x40] sm:$0xff] %v262_v8  ;;  %v266_v10 = vld [vmem:[%s1001_s23 + $0xa0] sm:$0xff]  ;;  %v268_v11 = vld [vmem:[%s1001_s23 + $0xb0] sm:$0xff]  ;;  %265 = vst [vmem:[%s183_s26 + $0x48] sm:$0xff] %v264_v9 }
  0x2e   : > { %267 = vst [vmem:[%s183_s26 + $0x50] sm:$0xff] %v266_v10  ;;  %269 = vst [vmem:[%s183_s26 + $0x58] sm:$0xff] %v268_v11  ;;  %v270_v12 = vld [vmem:[%s1001_s23 + $0xc0] sm:$0xff]  ;;  %v272_v13 = vld [vmem:[%s1001_s23 + $0xd0] sm:$0xff] }
  0x2f   : > { %v274_v14 = vld [vmem:[%s1001_s23 + $0xe0] sm:$0xff]  ;;  %271 = vst [vmem:[%s183_s26 + $0x60] sm:$0xff] %v270_v12  ;;  %273 = vst [vmem:[%s183_s26 + $0x68] sm:$0xff] %v272_v13  ;;  %v276_v15 = vld [vmem:[%s1001_s23 + $0xf0] sm:$0xff] }
  0x30   : > { %275 = vst [vmem:[%s183_s26 + $0x70] sm:$0xff] %v274_v14  ;;  %277 = vst [vmem:[%s183_s26 + $0x78] sm:$0xff] %v276_v15 }
  0x31 PF: > { %p583_p0 = scmp.ge.s32.totalorder %s876_s21, 1  ;;  %p282_p1 = scmp.lt.s32.totalorder %s876_s21, 5 }
  0x33   : > { %p283_p2 = pnand %p583_p0, %p282_p1 }
  0x34   : > { %s289_s27 = sand.u32 (!%p283_p2), 1, %s852_s15   ;;  %s320_s28 = sand.u32 (!%p283_p2), 1, %s844_s13  }
  0x35   : > { %286 = sbr.rel (%p283_p2) target bundleno = 412 (0x19c), region = 66  ;;  %s584_s29 = sshll.u32 (!%p283_p2), %s289_s27, 7 }
  0x36   : > { %s1025_s4 = sshll.u32 (!%p283_p2), %s320_s28, 3  ;;  %p323_p3 = scmp.lt.s32.totalorder (!%p283_p2), %s864_s18, 1 }
  0x37   : > { %p325_p4 = scmp.lt.s32.totalorder (!%p283_p2), %s860_s17, 1  ;;  %s1036_s25 = scalar_lea.vmem (!%p283_p2), [#allocation3], %s584_s29 }
  0x38   : > { %s322_s15 = scalar_lea.vmem (!%p283_p2), [#allocation4], %s1025_s4  ;;  %p588_p5 = scmp.ne.s32.totalorder (!%p283_p2), %s860_s17, 0 }
  0x3c   : > { %s324_s8 = scalar_select %p323_p3, %s864_s18, 1 }
  0x3d   : > { %s326_s9 = scalar_select %p325_p4, %s860_s17, 1 }
  0x3e   : > { %s586_s10 = sshll.u32 %s324_s8, 1  ;;  %338 = sbr.rel (%p588_p5) target bundleno = 69 (0x45), region = 74  ;;  %v878_v16 = vmov (!%p588_p5), 0.0  }
  0x3f   : > { %s328_s11 = sadd.s32 %s586_s10, %s326_s9  ;;  %339 = vst [vmem:[#allocation2] sm:$0xff] (!%p588_p5), %v878_v16 }
  0x40   : > { %s587_s22 = sshll.u32 %s328_s11, 3 }
  0x41   : > { %s1034_s1 = scalar_lea.vmem %s1124_s0, %s587_s22 }
  0x45 PF: > { %v342_v17 = vld [vmem:[%s1036_s25] sm:$0xff]  ;;  %v343_v18 = vld [vmem:[%s1036_s25 + $0x8] sm:$0xff]  ;;  %v879_v19 = vmov 0.0|0.0   ;;  %vm880_vm0 = vmmov 0   ;;  %v881_v21 = vmov 0.0   ;;  %v344_v22 = vld [vmem:[%s1036_s25 + $0x10] sm:$0xff] }
  0x46   : > { %647 = vmatprep.subr.bf16.mxu0 %v879_v19  ;;  %v648_v20 = vpack.c.bf16 %v343_v18, %v342_v17  ;;  %644 = vmatprep.mubr.msk.f32.mxu0 %vm880_vm0, %v881_v21  ;;  %v345_v23 = vld [vmem:[%s1036_s25 + $0x18] sm:$0xff]  ;;  %v346_v25 = vld [vmem:[%s1036_s25 + $0x20] sm:$0xff]  ;;  %v347_v26 = vld [vmem:[%s1036_s25 + $0x28] sm:$0xff]  ;;  %p589_p6 = scmp.ne.s32.totalorder %s860_s17, 1 }
  0x47   : > { %v651_v24 = vpack.c.bf16 %v345_v23, %v344_v22  ;;  %v654_v27 = vpack.c.bf16 %v347_v26, %v346_v25  ;;  %v348_v28 = vld [vmem:[%s1036_s25 + $0x30] sm:$0xff]  ;;  %v349_v29 = vld [vmem:[%s1036_s25 + $0x38] sm:$0xff]  ;;  %v350_v31 = vld [vmem:[%s1036_s25 + $0x40] sm:$0xff] }
  0x48   : > { %649 = vmatpush3.bf16.xpose.msra.mxu0 %v648_v20  ;;  %v657_v30 = vpack.c.bf16 %v349_v29, %v348_v28  ;;  %v351_v32 = vld [vmem:[%s1036_s25 + $0x48] sm:$0xff]  ;;  %v352_v34 = vld [vmem:[%s1036_s25 + $0x50] sm:$0xff]  ;;  %v353_v35 = vld [vmem:[%s1036_s25 + $0x58] sm:$0xff] }
  0x49   : > { %650 = vmatprep.subr.bf16.mxu0 %v879_v19  ;;  %v660_v33 = vpack.c.bf16 %v351_v32, %v350_v31  ;;  %v663_v36 = vpack.c.bf16 %v353_v35, %v352_v34  ;;  %v354_v37 = vld [vmem:[%s1036_s25 + $0x60] sm:$0xff]  ;;  %v355_v38 = vld [vmem:[%s1036_s25 + $0x68] sm:$0xff]  ;;  %v356_v40 = vld [vmem:[%s1036_s25 + $0x70] sm:$0xff] }
  0x4a   : > { %v666_v39 = vpack.c.bf16 %v355_v38, %v354_v37  ;;  %v357_v41 = vld [vmem:[%s1036_s25 + $0x78] sm:$0xff] }
  0x4b   : > { %v669_v42 = vpack.c.bf16 %v357_v41, %v356_v40  ;;  %v341_v43 = vld [vmem:[%s1034_s1] sm:$0xff] }
  0x4c   : > { %v340_v44 = vld [vmem:[#allocation2] sm:$0xff] }
  0x4d   : > { %v590_v49 = vld [vmem:[%s1126_s2] ss:$0 sm:$0xff] (!%p589_p6) }
  0x50   : > { %652 = vmatpush3.bf16.xpose.msra.mxu0 %v651_v24 }
  0x51   : > { %653 = vmatprep.subr.bf16.mxu0 %v879_v19 }
  0x58   : > { %655 = vmatpush3.bf16.xpose.msra.mxu0 %v654_v27 }
  0x59   : > { %656 = vmatprep.subr.bf16.mxu0 %v879_v19 }
  0x60   : > { %658 = vmatpush3.bf16.xpose.msra.mxu0 %v657_v30 }
  0x61   : > { %659 = vmatprep.subr.bf16.mxu0 %v879_v19 }
  0x68   : > { %661 = vmatpush3.bf16.xpose.msra.mxu0 %v660_v33 }
  0x69   : > { %662 = vmatprep.subr.bf16.mxu0 %v879_v19 }
  0x70   : > { %664 = vmatpush3.bf16.xpose.msra.mxu0 %v663_v36 }
  0x71   : > { %665 = vmatprep.subr.bf16.mxu0 %v879_v19 }
  0x78   : > { %667 = vmatpush3.bf16.xpose.msra.mxu0 %v666_v39 }
  0x79   : > { %668 = vmatprep.subr.bf16.mxu0 %v879_v19 }
  0x80   : > { %670 = vmatpush3.bf16.xpose.msra.mxu0 %v669_v42 }
  0x87   : > { %645 = vmatmul.mubr.f32.vlgmr.msra.gmra.mrb[0].mxu0 %v341_v43 }
 0x157   : > { %433 = sbr.rel (%p589_p6) target bundleno = 388 (0x184), region = 78 }
 0x15a   : > { %v424_v45 = vpop.f32.mrb[0].mxu0 }
 0x15b   : > { %v428_v46 = vadd.f32 %v424_v45, %v340_v44  ;;  %v646_v47 = vpop.f32.mrb[1].mxu0 }
 0x15d   : > { %429 = vst [vmem:[#allocation2] sm:$0xff] %v428_v46 }
 0x164   : > { %v434_v48 = vld [vmem:[#allocation2] sm:$0xff] }
 0x165   : > { %v442_v50 = vadd.f32 %v590_v49, %v434_v48 }
 0x167   : > { %v443_v51 = vsub.f32 0.0, %v442_v50 }
 0x169   : > { %v444_v52 = vmul.f32 1.442695, %v443_v51 }
 0x16b   : > { %762 = vpow2.f32 %v444_v52 }
 0x175   : > { %v763_v53 = vpop.eup %762 }
 0x176   : > { %v446_v54 = vadd.f32 1.0, %v763_v53 }
 0x178   : > { %764 = vrcp.f32 %v446_v54 }
 0x182   : > { %v765_v55 = vpop.eup %764 }
 0x183   : > { %448 = vst [vmem:[%s322_s15] sm:$0xff] %v765_v55 }
 0x184 PF: > { %s592_s1 = sshll.u32 %s864_s18, 7  ;;  %s464_s9 = sshll.u32 %s322_s15, 4  ;;  %s465_s9 = int_to_ptr.vmem [resolvable:$true] %s464_s9 }
 0x185   : > { %s1067_s8 = scalar_lea.hbm %s1127_s3, %s592_s1  ;;  %s450_s10 = scalar_lea.sflag [#allocation5], %s320_s28 }
 0x186   : > { %s766_s11 = scalar_lea.vmem %s465_s9, 128  ;;  %s882_s22 = smov [#allocation4]  }
 0x187   : > { %p767_p7 = scmp.ne.s32.totalorder %s465_s9, %s766_s11  ;;  %s770_s23 = sshll.u32 %s882_s22, 4  ;;  %s771_s23 = int_to_ptr.vmem [resolvable:$false] %s770_s23 }
 0x188   : > { %s772_s26 = scalar_lea.vmem %s771_s23, 256  ;;  %p773_p11 = scmp.lt.s32.totalorder %s465_s9, %s771_s23 }
 0x189   : > { %p768_p8 = pnand %p767_p7, %p982_p10  ;;  %p774_p13 = scmp.lt.s32.totalorder %s772_s26, %s766_s11 }
 0x18b   : > { %p769_p9 = pneg %p768_p8  ;;  %p775_p0 = por %p774_p13, %p773_p11 }
 0x18d   : > { %p776_p1 = pnand %p775_p0, %p769_p9 }
 0x18f   : > { %779 = shalt.err (!%p776_p1)
}
 0x190   : > { %s780_s18 = scalar_lea.hbm %s1067_s8, 128  ;;  %s784_s15 = scalar_lea.hbm %s1127_s3, 256 }
 0x191   : > { %p781_p2 = scmp.ne.s32.totalorder %s1067_s8, %s780_s18  ;;  %p785_p5 = scmp.lt.u32.totalorder %s1067_s8, %s1127_s3 }
 0x192   : > { %p786_p6 = scmp.lt.u32.totalorder %s784_s15, %s780_s18  ;;  %p788_p8 = scmp.lt.u32.totalorder %s780_s18, %s1067_s8 }
 0x193   : > { %p782_p3 = pnand %p781_p2, %p982_p10 }
 0x194   : > { %p787_p7 = por %p786_p6, %p785_p5 }
 0x195   : > { %p783_p4 = pneg %p782_p3 }
 0x196   : > { %p789_p9 = por %p788_p8, %p787_p7 }
 0x198   : > { %p790_p11 = pnand %p789_p9, %p783_p4 }
 0x19a   : > { %793 = shalt.err (!%p790_p11)
}
 0x19b   : > { %671 = dma.vmem_to_hbm [thread:$0]  (%p982_p10), %s465_s9, 128, %s1067_s8, %s450_s10  }
 0x19c PF: > { %p677_p13 = scmp.ge.s32.totalorder %s876_s21, 2  ;;  %s476_s1 = sand.u32 1, %s840_s12  }
 0x19d   : > { %s477_s17 = scalar_lea.sflag [#allocation5], %s476_s1 }
 0x19e   : > { %p674_p0 = pnand %p677_p13, %p989_p12 }
 0x1a0   : > { %835 = dma.done.wait (!%p674_p0), %s477_s17, 128  }
 0x1a1   : > { %837 = vsyncadd (!%p674_p0), %s477_s17, 4294967168  ;;  %s16_s21 = sadd.s32 1, %s876_s21   ;;  %s1135_s5 = sld [smem:[#allocation7_spill]] }
 0x1a2   : > { %p13_p1 = scmp.ge.s32.totalorder %s16_s21, 6   ;;  %s1136_s12 = smov %s844_s13 }
 0x1a3   : > { %s1137_s13 = smov %s848_s14  ;;  %s1138_s14 = smov %s987_s6 }
 0x1a4   : > { %s1139_s15 = smov %s856_s16  ;;  %s1140_s16 = smov %s976_s30 }
 0x1a5   : > { %s1141_s17 = smov %s868_s19  ;;  %s1142_s18 = smov %s872_s20 }
 0x1a6   : > { %s1143_s19 = smov %s1146_s24  ;;  %15 = sbr.rel (!%p13_p1) target bundleno = 8 (0x8), region = 124 }
 0x1a7   : > { %s1144_s20 = smov %s1135_s5 }
 0x1ad   :  { %482 = vsyncpa [#allocation5], 1 }
 0x1ae   :  { %484 = vsyncpa [#allocation5 + $0x1], 1 }

</bundles_post_ra>
